<compile_context>
chip_gen: v5e
topology: v5e:2x2
jax: 0.10.0
libtpu: 0.0.40
codegen_flags: <defaults>
</compile_context>

<pallas_src>
import numpy as np
import jax
import jax.numpy as jnp
from jax.experimental import pallas as pl
from jax.experimental.pallas import tpu as pltpu


_NEG_BIG = -1e30  # "-inf-like" pad value for the output-layer bias (safer than true -inf)


def _round_up(x, m):
    return ((x + m - 1) // m) * m


def _make_mlp_kernel(num_hidden_layers):
    """Kernel: `num_hidden_layers` (Linear+ReLU) layers + output Linear + log_softmax.

    The output layer is lane-padded to a multiple of 128 on the host: padded weight columns are
    zero and padded bias lanes are -1e30, so padded logits drop out of the softmax normalizer
    with no in-kernel masking.
    """

    def kernel(*refs):
        x_ref = refs[0]
        out_ref = refs[-1]
        params = refs[1:-1]  # [w1, b1, w2, b2, ..., w_out, b_out], all f32

        h = x_ref[...]  # f32 activations
        for li in range(num_hidden_layers):
            w = params[2 * li][...]          # (in, out)
            b = params[2 * li + 1][...]      # (1, out)
            h = jnp.maximum(jnp.dot(h, w, preferred_element_type=jnp.float32) + b, 0.0)
            # TODO(synk): training-mode dropout mask here (pltpu.prng_*); eval mode is identity.

        wo = params[2 * num_hidden_layers][...]      # (hidden_last, padded_out), zero-padded cols
        bo = params[2 * num_hidden_layers + 1][...]  # (1, padded_out), -1e30 in padded lanes
        logits = jnp.dot(h, wo, preferred_element_type=jnp.float32) + bo

        # log_softmax along the feature axis (dim=1), f32 math.
        m = jnp.max(logits, axis=1, keepdims=True)
        s = logits - m
        lse = jnp.log(jnp.sum(jnp.exp(s), axis=1, keepdims=True))
        out_ref[...] = s - lse

    return kernel


def prepare_params(weights, biases):
    """Host-side one-time prep (f32 throughout): pad the output layer to a lane-dense
    (multiple-of-128) width with zero weight columns and -1e30 bias lanes."""
    out_dim = weights[-1].shape[1]
    padded_out = _round_up(max(out_dim, 128), 128)
    prepped = []
    last = len(weights) - 1
    for li, (w, b) in enumerate(zip(weights, biases)):
        wq = w.astype(jnp.float32)
        bq = b.astype(jnp.float32)
        if li == last and padded_out != out_dim:
            pad = padded_out - out_dim
            wq = jnp.pad(wq, ((0, 0), (0, pad)))                                # zero columns
            bq = jnp.pad(bq, ((0, 0), (0, pad)), constant_values=_NEG_BIG)      # -inf-like bias
        prepped.append(wq)
        prepped.append(bq)
    return prepped, out_dim, padded_out


def mlp_forward_pallas(x, prepped_params, out_dim, padded_out, *, block_batch=2048):
    """x: (B, input_size) f32. prepped_params: flat [w1,b1,...,w_out,b_out] from prepare_params."""
    num_hidden = len(prepped_params) // 2 - 1
    B, in_dim = x.shape

    # Batch tiling: TB rows per grid step (multiple of 8 sublanes). Big TB amortizes the ~0.35us
    # per-step overhead; cap TB so there are >=2 grid steps when the batch is splittable, so the
    # "parallel" batch axis can shard across v7x's two TensorCores.
    TB = _round_up(min(block_batch, B), 8)
    if B > 2 * 8 and _round_up(B, TB) // TB < 2:
        TB = _round_up(pl.cdiv(B, 2), 8)
    B_pad = _round_up(B, TB)
    if B_pad != B:
        x = jnp.pad(x, ((0, B_pad - B), (0, 0)))

    args = [x] + list(prepped_params)
    in_specs = [pl.BlockSpec((TB, in_dim), lambda i: (i, 0))]
    for p in prepped_params:
        # Weights/biases are small: keep fully VMEM-resident across all batch blocks.
        in_specs.append(pl.BlockSpec(p.shape, lambda i: (0, 0)))

    # VMEM budget: double-buffered x + out blocks plus resident params. Only raise the scoped
    # limit when we would exceed v5e's 16 MiB default (keeps defaults on v6e/v7x untouched).
    tile_bytes = 2 * (TB * in_dim * 4 + TB * padded_out * 4)
    param_bytes = sum(2 * int(np.prod(p.shape)) * p.dtype.itemsize for p in prepped_params)
    need = tile_bytes + param_bytes
    cp_kwargs = dict(dimension_semantics=("parallel",))
    if need > (12 << 20):
        cp_kwargs["vmem_limit_bytes"] = int(min(need + (8 << 20), 64 << 20))

    kernel = _make_mlp_kernel(num_hidden)

    out = pl.pallas_call(
        kernel,
        grid=(B_pad // TB,),
        out_shape=jax.ShapeDtypeStruct((B_pad, padded_out), jnp.float32),
        in_specs=in_specs,
        out_specs=pl.BlockSpec((TB, padded_out), lambda i: (i, 0)),
        compiler_params=pltpu.CompilerParams(**cp_kwargs),
    )(*args)
    return out[:B, :out_dim]


def init_params(key, input_size, hidden_layers, output_size):
    """Deterministic PyTorch-Linear-style init: U(-1/sqrt(fan_in), 1/sqrt(fan_in)).
    Weights stored as (in, out) so the kernel does x @ W directly; biases as (1, out)."""
    dims = [input_size] + list(hidden_layers) + [output_size]
    weights, biases = [], []
    for i in range(len(dims) - 1):
        fan_in, fan_out = dims[i], dims[i + 1]
        key, kw, kb = jax.random.split(key, 3)
        bound = 1.0 / np.sqrt(fan_in)
        w = jax.random.uniform(kw, (fan_in, fan_out), jnp.float32, -bound, bound)
        b = jax.random.uniform(kb, (1, fan_out), jnp.float32, -bound, bound)
        weights.append(w)
        biases.append(b)
    return weights, biases


def reference_forward(x, weights, biases):
    h = x
    for w, b in zip(weights[:-1], biases[:-1]):
        h = jnp.maximum(h @ w + b, 0.0)
    logits = h @ weights[-1] + biases[-1]
    return jax.nn.log_softmax(logits, axis=1)


if __name__ == "__main__":
    # Shapes consistent with the module: batch=8, input_size=32, hidden_layers=[64, 32],
    # output_size=16, drop=0.2 (identity in eval mode).
    input_size = 32
    hidden_layers = [64, 32]
    output_size = 16
    batch = 8

    key = jax.random.PRNGKey(0)
    key, kx = jax.random.split(key)
    x = jax.random.normal(kx, (batch, input_size), jnp.float32)

    weights, biases = init_params(key, input_size, hidden_layers, output_size)
    prepped, out_dim, padded_out = prepare_params(weights, biases)

    out = mlp_forward_pallas(x, prepped, out_dim, padded_out)
    out = jax.block_until_ready(out)

    ref = jax.block_until_ready(reference_forward(x, weights, biases))
    # f32 operands with f32 accumulation; modest tolerance only to absorb MXU default-precision
    # rounding of the f32 matmuls.
    np.testing.assert_allclose(np.asarray(out), np.asarray(ref), rtol=1e-2, atol=1e-2)

    print("KERNEL_OK")
</pallas_src>

<mosaic_0001>
module attributes {stable_mosaic.version = 11 : i64} {
  func.func @kernel(%arg0: i32, %arg1: memref<8x32xf32, #tpu.memory_space<vmem>>, %arg2: memref<32x64xf32, #tpu.memory_space<vmem>>, %arg3: memref<1x64xf32, #tpu.memory_space<vmem>>, %arg4: memref<64x32xf32, #tpu.memory_space<vmem>>, %arg5: memref<1x32xf32, #tpu.memory_space<vmem>>, %arg6: memref<32x128xf32, #tpu.memory_space<vmem>>, %arg7: memref<1x128xf32, #tpu.memory_space<vmem>>, %arg8: memref<8x128xf32, #tpu.memory_space<vmem>>) attributes {dimension_semantics = [#tpu.dimension_semantics<parallel>], iteration_bounds = array<i64: 1>, scalar_prefetch = 0 : i64, scratch_operands = 0 : i64, tpu.core_type = #tpu.core_type<tc>, window_params = [{transform_indices = @transform_0, window_bounds = array<i64: 8, 32>}, {pipeline_mode = #tpu.pipeline_mode<synchronous>, transform_indices = @transform_1, window_bounds = array<i64: 32, 64>}, {pipeline_mode = #tpu.pipeline_mode<synchronous>, transform_indices = @transform_2, window_bounds = array<i64: 1, 64>}, {pipeline_mode = #tpu.pipeline_mode<synchronous>, transform_indices = @transform_3, window_bounds = array<i64: 64, 32>}, {pipeline_mode = #tpu.pipeline_mode<synchronous>, transform_indices = @transform_4, window_bounds = array<i64: 1, 32>}, {pipeline_mode = #tpu.pipeline_mode<synchronous>, transform_indices = @transform_5, window_bounds = array<i64: 32, 128>}, {pipeline_mode = #tpu.pipeline_mode<synchronous>, transform_indices = @transform_6, window_bounds = array<i64: 1, 128>}, {transform_indices = @transform_7, window_bounds = array<i64: 8, 128>}]} {
    %c0 = arith.constant 0 : index
    %c0_0 = arith.constant 0 : index
    %0 = vector.load %arg1[%c0, %c0_0] : memref<8x32xf32, #tpu.memory_space<vmem>>, vector<8x32xf32>
    %c0_1 = arith.constant 0 : index
    %c0_2 = arith.constant 0 : index
    %1 = vector.load %arg2[%c0_1, %c0_2] : memref<32x64xf32, #tpu.memory_space<vmem>>, vector<32x64xf32>
    %c0_3 = arith.constant 0 : index
    %c0_4 = arith.constant 0 : index
    %2 = vector.load %arg3[%c0_3, %c0_4] : memref<1x64xf32, #tpu.memory_space<vmem>>, vector<1x64xf32>
    %cst = arith.constant dense<0.000000e+00> : vector<8x64xf32>
    %3 = tpu.matmul %0, %1, %cst {dimension_numbers = #tpu.dot_dimension_numbers<[1], [0], [0], [1], [0, 0, 1, 1], [], []>} : vector<8x32xf32>, vector<32x64xf32>, vector<8x64xf32> -> vector<8x64xf32>
    %4 = vector.broadcast %2 : vector<1x64xf32> to vector<8x64xf32>
    %5 = arith.addf %3, %4 : vector<8x64xf32>
    %cst_5 = arith.constant 0.000000e+00 : f32
    %6 = vector.broadcast %cst_5 : f32 to vector<8x64xf32>
    %7 = arith.maximumf %5, %6 : vector<8x64xf32>
    %c0_6 = arith.constant 0 : index
    %c0_7 = arith.constant 0 : index
    %8 = vector.load %arg4[%c0_6, %c0_7] : memref<64x32xf32, #tpu.memory_space<vmem>>, vector<64x32xf32>
    %c0_8 = arith.constant 0 : index
    %c0_9 = arith.constant 0 : index
    %9 = vector.load %arg5[%c0_8, %c0_9] : memref<1x32xf32, #tpu.memory_space<vmem>>, vector<1x32xf32>
    %cst_10 = arith.constant dense<0.000000e+00> : vector<8x32xf32>
    %10 = tpu.matmul %7, %8, %cst_10 {dimension_numbers = #tpu.dot_dimension_numbers<[1], [0], [0], [1], [0, 0, 1, 1], [], []>} : vector<8x64xf32>, vector<64x32xf32>, vector<8x32xf32> -> vector<8x32xf32>
    %11 = vector.broadcast %9 : vector<1x32xf32> to vector<8x32xf32>
    %12 = arith.addf %10, %11 : vector<8x32xf32>
    %cst_11 = arith.constant 0.000000e+00 : f32
    %13 = vector.broadcast %cst_11 : f32 to vector<8x32xf32>
    %14 = arith.maximumf %12, %13 : vector<8x32xf32>
    %c0_12 = arith.constant 0 : index
    %c0_13 = arith.constant 0 : index
    %15 = vector.load %arg6[%c0_12, %c0_13] : memref<32x128xf32, #tpu.memory_space<vmem>>, vector<32x128xf32>
    %c0_14 = arith.constant 0 : index
    %c0_15 = arith.constant 0 : index
    %16 = vector.load %arg7[%c0_14, %c0_15] : memref<1x128xf32, #tpu.memory_space<vmem>>, vector<1x128xf32>
    %cst_16 = arith.constant dense<0.000000e+00> : vector<8x128xf32>
    %17 = tpu.matmul %14, %15, %cst_16 {dimension_numbers = #tpu.dot_dimension_numbers<[1], [0], [0], [1], [0, 0, 1, 1], [], []>} : vector<8x32xf32>, vector<32x128xf32>, vector<8x128xf32> -> vector<8x128xf32>
    %18 = vector.broadcast %16 : vector<1x128xf32> to vector<8x128xf32>
    %19 = arith.addf %17, %18 : vector<8x128xf32>
    %cst_17 = arith.constant dense<0xFF800000> : vector<8xf32>
    %20 = vector.multi_reduction <maximumf>, %19, %cst_17 [1] : vector<8x128xf32> to vector<8xf32>
    %21 = vector.shape_cast %20 : vector<8xf32> to vector<8x1xf32>
    %22 = vector.broadcast %21 : vector<8x1xf32> to vector<8x128xf32>
    %23 = arith.subf %19, %22 : vector<8x128xf32>
    %24 = math.exp %23 : vector<8x128xf32>
    %cst_18 = arith.constant dense<0.000000e+00> : vector<8xf32>
    %25 = vector.multi_reduction <add>, %24, %cst_18 [1] : vector<8x128xf32> to vector<8xf32>
    %26 = vector.shape_cast %25 : vector<8xf32> to vector<8x1xf32>
    %27 = math.log %26 : vector<8x1xf32>
    %28 = vector.broadcast %27 : vector<8x1xf32> to vector<8x128xf32>
    %29 = arith.subf %23, %28 : vector<8x128xf32>
    %c0_19 = arith.constant 0 : index
    %c0_20 = arith.constant 0 : index
    %30 = vector.load %arg8[%c0_19, %c0_20] : memref<8x128xf32, #tpu.memory_space<vmem>>, vector<8x128xf32>
    tpu.vector_store %arg8[%c0_19, %c0_20], %29 {strides = array<i32>} : memref<8x128xf32, #tpu.memory_space<vmem>>, vector<8x128xf32>,
    return
  }
  func.func @transform_0(%arg0: i32) -> (i32, i32) {
    %c0_i32 = arith.constant 0 : i32
    %c0_i32_0 = arith.constant 0 : i32
    return %arg0, %c0_i32 : i32, i32
  }
  func.func @transform_1(%arg0: i32) -> (i32, i32) {
    %c0_i32 = arith.constant 0 : i32
    %c0_i32_0 = arith.constant 0 : i32
    %c0_i32_1 = arith.constant 0 : i32
    return %c0_i32, %c0_i32_0 : i32, i32
  }
  func.func @transform_2(%arg0: i32) -> (i32, i32) {
    %c0_i32 = arith.constant 0 : i32
    %c0_i32_0 = arith.constant 0 : i32
    %c0_i32_1 = arith.constant 0 : i32
    return %c0_i32, %c0_i32_0 : i32, i32
  }
  func.func @transform_3(%arg0: i32) -> (i32, i32) {
    %c0_i32 = arith.constant 0 : i32
    %c0_i32_0 = arith.constant 0 : i32
    %c0_i32_1 = arith.constant 0 : i32
    return %c0_i32, %c0_i32_0 : i32, i32
  }
  func.func @transform_4(%arg0: i32) -> (i32, i32) {
    %c0_i32 = arith.constant 0 : i32
    %c0_i32_0 = arith.constant 0 : i32
    %c0_i32_1 = arith.constant 0 : i32
    return %c0_i32, %c0_i32_0 : i32, i32
  }
  func.func @transform_5(%arg0: i32) -> (i32, i32) {
    %c0_i32 = arith.constant 0 : i32
    %c0_i32_0 = arith.constant 0 : i32
    %c0_i32_1 = arith.constant 0 : i32
    return %c0_i32, %c0_i32_0 : i32, i32
  }
  func.func @transform_6(%arg0: i32) -> (i32, i32) {
    %c0_i32 = arith.constant 0 : i32
    %c0_i32_0 = arith.constant 0 : i32
    %c0_i32_1 = arith.constant 0 : i32
    return %c0_i32, %c0_i32_0 : i32, i32
  }
  func.func @transform_7(%arg0: i32) -> (i32, i32) {
    %c0_i32 = arith.constant 0 : i32
    %c0_i32_0 = arith.constant 0 : i32
    return %arg0, %c0_i32 : i32, i32
  }
}

</mosaic_0001>

<bundles_post_ra>
// kernel: tpu_custom_call.1
= control target key start
LH: loop header
LB: loop body
LE: loop exit
PB: predicated region body
PF: predicated region fallthrough
CT: control target
= control target key end

     0   :  { %s299_s0 = inlined_call_operand.vmem [shape: f32[8,32], index: 0, kind: input, shape index: {}]   ;;  %s300_s1 = inlined_call_operand.vmem [shape: f32[32,64], index: 1, kind: input, shape index: {}]   ;;  %s301_s2 = inlined_call_operand.vmem [shape: f32[1,64], index: 2, kind: input, shape index: {}]   ;;  %s302_s3 = inlined_call_operand.vmem [shape: f32[64,32], index: 3, kind: input, shape index: {}]   ;;  %s303_s4 = inlined_call_operand.vmem [shape: f32[1,32], index: 4, kind: input, shape index: {}]   ;;  %s304_s5 = inlined_call_operand.vmem [shape: f32[32,128], index: 5, kind: input, shape index: {}]   ;;  %s305_s6 = inlined_call_operand.vmem [shape: f32[1,128], index: 6, kind: input, shape index: {}]   ;;  %s306_s7 = inlined_call_operand.hbm [shape: f32[8,128], index: 7, kind: output, shape index: {}]  }
   0x1   :  { %v31_v0 = vld [vmem:[%s300_s1 + $0x18] sm:$0xff]  ;;  %v30_v1 = vld [vmem:[%s300_s1 + $0x10] sm:$0xff]  ;;  %v29_v3 = vld [vmem:[%s300_s1 + $0x8] sm:$0xff] }
   0x2   :  { %52 = vmatpush.msra.mxu0 %v31_v0  ;;  %v68_v2 = vld [vmem:[%s302_s3 + $0x38] sm:$0xff]  ;;  %v67_v4 = vld [vmem:[%s302_s3 + $0x30] sm:$0xff]  ;;  %v28_v5 = vld [vmem:[%s300_s1] sm:$0xff] }
   0x3   :  { %85 = vmatpush.msra.mxu1 %v68_v2  ;;  %v66_v6 = vld [vmem:[%s302_s3 + $0x28] sm:$0xff] }
   0x4   :  { %53 = vmatpush.msra.mxu0 %v30_v1 }
   0x5   :  { %86 = vmatpush.msra.mxu1 %v67_v4 }
   0x6   :  { %12 = vsyncpa [#allocation3], 0  ;;  %54 = vmatpush.msra.mxu0 %v29_v3  ;;  %v27_v7 = vld [vmem:[%s299_s0] sm:$0xff]  ;;  %vm36_vm0 = vcmask 261120   ;;  %v64_v9 = vld [vmem:[%s302_s3 + $0x18] sm:$0xff]  ;;  %vm73_vm1 = vcmask 523264  }
   0x7   :  { %v65_v8 = vld [vmem:[%s302_s3 + $0x20] sm:$0xff]  ;;  %87 = vmatpush.msra.mxu1 %v66_v6  ;;  %v63_v10 = vld [vmem:[%s302_s3 + $0x10] sm:$0xff]  ;;  %v62_v11 = vld [vmem:[%s302_s3 + $0x8] sm:$0xff]  ;;  %s147_s16 = sshll.u32 %s306_s7, 4  ;;  %s148_s16 = int_to_ptr.hbm [resolvable:$true] %s147_s16 }
   0x8   :  { %55 = vmatpush.msra.mxu0 %v28_v5  ;;  %v61_v12 = vld [vmem:[%s302_s3] sm:$0xff]  ;;  %v101_v13 = vld [vmem:[%s304_s5 + $0x18] sm:$0xff]  ;;  %v100_v18 = vld [vmem:[%s304_s5 + $0x10] sm:$0xff] }
   0x9   :  { %156 = vmatmul.msk.f32.vlgmr.msra.gmra.mxu0 %vm36_vm0, %v27_v7  ;;  %88 = vmatpush.msra.mxu1 %v65_v8  ;;  %v160_v14 = vld [vmem:[%s301_s2] ss:$0 sm:$0xff]  ;;  %v99_v19 = vld [vmem:[%s304_s5 + $0x8] sm:$0xff] }
   0xa   :  { %121 = vmatpush.msra.mxu2 %v101_v13  ;;  %v98_v20 = vld [vmem:[%s304_s5] sm:$0xff] }
   0xb   :  { %89 = vmatpush.msra.mxu1 %v64_v9  ;;  %v161_v21 = vld [vmem:[%s303_s4] ss:$0 sm:$0xff]  ;;  %s193_s4 = smov [#allocation2]  }
   0xc   :  { %122 = vmatpush.msra.mxu2 %v100_v18  ;;  %v162_v25 = vld [vmem:[%s305_s6] ss:$0 sm:$0xff]  ;;  %s145_s5 = sshll.u32 %s193_s4, 4  ;;  %s146_s5 = int_to_ptr.vmem [resolvable:$true] %s145_s5 }
   0xd   :  { %90 = vmatpush.msra.mxu1 %v63_v10 }
   0xe   :  { %123 = vmatpush.msra.mxu2 %v99_v19 }
   0xf   :  { %91 = vmatpush.msra.mxu1 %v62_v11 }
  0x10   :  { %124 = vmatpush.msra.mxu2 %v98_v20 }
  0x11   :  { %92 = vmatpush.msra.mxu1 %v61_v12 }
  0x86   :  { %v57_v15 = vpop.f32.mrf.mxu0 }
  0x87   :  { %v58_v16 = vadd.f32 %v160_v14, %v57_v15 }
  0x89   :  { %v60_v17 = vmax.f32 %v58_v16, 0.0 }
  0x8b   :  { %157 = vmatmul.msk.f32.vlgmr.msra.gmra.mxu1 %vm73_vm1, %v60_v17 }
 0x108   :  { %v94_v22 = vpop.f32.mrf.mxu1 }
 0x109   :  { %v95_v23 = vadd.f32 %v161_v21, %v94_v22 }
 0x10b   :  { %v97_v24 = vmax.f32 %v95_v23, 0.0 }
 0x10d   :  { %158 = vmatmul.msk.f32.vlgmr.msra.gmra.mxu2 %vm36_vm0, %v97_v24 }
 0x190   :  { %v126_v26 = vpop.f32.mrf.mxu2 }
 0x191   :  { %v127_v27 = vadd.f32 %v162_v25, %v126_v26 }
 0x193   :  { %129 = vmax.xlane.f32.xlu0 %v127_v27 }
 0x206   :  { %v130_v28 = vpop.xlane.xlu0 %129 }
 0x207   :  { %v131_v29 = vsub.f32 %v127_v27, %v130_v28 }
 0x209   :  { %v132_v30 = vmul.f32 1.442695, %v131_v29 }
 0x20b   :  { %163 = vpow2.f32 %v132_v30 }
 0x211   :  { %v164_v31 = vpop.eup %163 }
 0x212   :  { %134 = vadd.xlane.f32.xlu0 %v164_v31 }
 0x285   :  { %v135_v32 = vpop.xlane.xlu0 %134 }
 0x286   :  { %165 = vlog2.f32 %v135_v32 }
 0x28c   :  { %v166_v33 = vpop.eup %165 }
 0x28d   :  { %v137_v34 = vmul.f32 0.6931472, %v166_v33 }
 0x28f   :  { %v138_v35 = vsub.f32 %v131_v29, %v137_v34 }
 0x291   :  { %139 = vst [vmem:[#allocation2] sm:$0xff] %v138_v35 }
 0x292   :  { %150 = dma.vmem_to_hbm [thread:$0]  %s146_s5, 128, %s148_s16, [#allocation3]  }
 0x293   :  { %191 = dma.done.wait [#allocation3], 128  }
 0x294   :  { %192 = vsyncadd [#allocation3], 4294967168 }
 0x295   :  { %155 = vsyncpa [#allocation3], 1 }

</bundles_post_ra>
